<compile_context>
chip_gen: v7x
topology: tpu7x:2x2x1
jax: 0.10.0
libtpu: 0.0.40
codegen_flags: <defaults>
</compile_context>

<pallas_src>
import jax
import jax.numpy as jnp
from jax.experimental import pallas as pl
from jax.experimental.pallas import tpu as pltpu


def _lane_fold(x):
    """Fold (C, TP) -> (C, 128) by summing 128-lane columns (pure VPU adds,
    lane-aligned static slices, no cross-lane XLU work)."""
    tp = x.shape[1]
    acc = x[:, 0:128]
    for j in range(1, tp // 128):
        acc = acc + x[:, j * 128:(j + 1) * 128]
    return acc


def _ce_dice_kernel(pred_ref, tgt_ref, out_ref, acc_i, acc_z, acc_y, acc_c):
    # pred_ref : (C, TP) logits tile (any float dtype; upcast here)
    # tgt_ref  : (1, TP) int32 labels (-1 marks padded pixels)
    # out_ref  : (C, 4)  per-batch-element stats [intersect, z_sum, y_sum, ce]
    # acc_*    : (C, 128) f32 VMEM scratch accumulators (resident across tiles)
    i = pl.program_id(1)

    @pl.when(i == 0)
    def _init():
        acc_i[...] = jnp.zeros_like(acc_i)
        acc_z[...] = jnp.zeros_like(acc_z)
        acc_y[...] = jnp.zeros_like(acc_y)
        acc_c[...] = jnp.zeros_like(acc_c)

    x = pred_ref[...].astype(jnp.float32)              # (C, TP)
    tgt = tgt_ref[...]                                 # (1, TP) int32
    C, TP = x.shape

    # Numerically stable softmax / log-softmax over the class (sublane) axis.
    m = jnp.max(x, axis=0, keepdims=True)              # (1, TP)
    e = jnp.exp(x - m)                                 # (C, TP)  EUP
    s = jnp.sum(e, axis=0, keepdims=True)              # (1, TP)
    inv_s = pl.reciprocal(s)                           # exact; 1 recip per pixel
    soft = e * inv_s                                   # softmax(pred, dim=1)
    logsoft = (x - m) - jnp.log(s)                     # log_softmax(pred, dim=1)

    cls = jax.lax.broadcasted_iota(jnp.int32, (C, TP), 0)
    onehot = jnp.where(cls == tgt, 1.0, 0.0)           # (C, TP); zero for pad
    valid = jnp.where(tgt >= 0, 1.0, 0.0)              # (1, TP); in-kernel mask

    # NOTE: for tiny C (e.g. 4) only C/8 of each vreg's sublanes carry data;
    # acceptable since the kernel is HBM-bound after the layout fixes.
    acc_i[...] += _lane_fold(soft * onehot)
    acc_z[...] += _lane_fold(soft * soft * valid)
    acc_y[...] += _lane_fold(onehot)
    acc_c[...] += _lane_fold(onehot * (-logsoft))

    @pl.when(i == pl.num_programs(1) - 1)
    def _finalize():
        out_ref[...] = jnp.concatenate(
            [
                jnp.sum(acc_i[...], axis=1, keepdims=True),
                jnp.sum(acc_z[...], axis=1, keepdims=True),
                jnp.sum(acc_y[...], axis=1, keepdims=True),
                jnp.sum(acc_c[...], axis=1, keepdims=True),
            ],
            axis=1,
        )


def ce_dice_loss(pred, target, num_classes, loss_weight=(0.4, 0.6),
                 max_tile=8192):
    """pred: (N, C, H, W) float logits; target: (N, H, W) int class labels."""
    N, C, H, W = pred.shape
    assert C == num_classes
    HW = H * W
    P = N * HW

    # Keep logits in their native dtype (bf16 input halves HBM traffic);
    # the kernel upcasts per tile.
    pred3 = pred.reshape(N, C, HW)
    tgt3 = target.reshape(N, 1, HW).astype(jnp.int32)

    # Tile selection: as large as practical (multiple of 128), capped so the
    # double-buffered pred stream stays ~<=4 MiB (safe on v7x's 64 MiB VMEM /
    # 32 MiB scoped default as well as v5e/v6e).
    itemsize = jnp.dtype(pred3.dtype).itemsize
    budget_lanes = max(128, (4 * 1024 * 1024) // max(1, C * itemsize * 2))
    budget_lanes = (budget_lanes // 128) * 128
    hw_pad128 = pl.cdiv(HW, 128) * 128
    tile = int(min(max_tile, budget_lanes, hw_pad128))
    tile = max(128, (tile // 128) * 128)

    HW_pad = pl.cdiv(HW, tile) * tile
    pad = HW_pad - HW
    if pad:
        pred3 = jnp.pad(pred3, ((0, 0), (0, 0), (0, pad)))
        tgt3 = jnp.pad(tgt3, ((0, 0), (0, 0), (0, pad)), constant_values=-1)

    grid = (N, HW_pad // tile)

    pred_bytes = N * C * HW_pad * itemsize
    tgt_bytes = N * HW_pad * 4
    cost = pl.CostEstimate(
        flops=int(12 * C * N * HW_pad),
        transcendentals=int((C + 2) * N * HW_pad),
        bytes_accessed=int(pred_bytes + tgt_bytes + N * C * 4 * 4),
    )

    # Grid axis 0 (batch) is "parallel" so v7x's two TensorCores both get work;
    # each produces its own (C, 4) partial, summed below in plain JAX.
    partials = pl.pallas_call(
        _ce_dice_kernel,
        out_shape=jax.ShapeDtypeStruct((N, C, 4), jnp.float32),
        grid_spec=pltpu.PrefetchScalarGridSpec(
            num_scalar_prefetch=0,
            grid=grid,
            in_specs=[
                pl.BlockSpec((pl.Squeezed(), C, tile), lambda n, i: (n, 0, i)),
                pl.BlockSpec((pl.Squeezed(), 1, tile), lambda n, i: (n, 0, i)),
            ],
            out_specs=pl.BlockSpec((pl.Squeezed(), C, 4), lambda n, i: (n, 0, 0)),
            scratch_shapes=[pltpu.VMEM((C, 128), jnp.float32)] * 4,
        ),
        compiler_params=pltpu.CompilerParams(
            dimension_semantics=("parallel", "arbitrary")),
        cost_estimate=cost,
    )(pred3, tgt3)

    stats = jnp.sum(partials, axis=0)          # (C, 4)
    intersect = stats[:, 0]
    z_sum = stats[:, 1]
    y_sum = stats[:, 2]
    ce_sum = jnp.sum(stats[:, 3])

    smooth = 1e-5
    # nDiceLoss: per-class dice loss, unit weights, averaged over classes.
    dice_per_class = 1.0 - (2.0 * intersect + smooth) / (z_sum + y_sum + smooth)
    loss_dice = jnp.sum(dice_per_class) / num_classes
    # nn.CrossEntropyLoss default: mean over all N*H*W elements.
    loss_ce = ce_sum / P

    return loss_weight[0] * loss_ce + loss_weight[1] * loss_dice


def _reference(pred, target, num_classes, loss_weight=(0.4, 0.6)):
    # Pure-JAX reference mirroring the PyTorch module.
    logsoft = jax.nn.log_softmax(pred, axis=1)
    soft = jax.nn.softmax(pred, axis=1)
    onehot = jax.nn.one_hot(target, num_classes, axis=1, dtype=jnp.float32)
    loss_ce = -jnp.mean(jnp.sum(onehot * logsoft, axis=1))
    smooth = 1e-5
    loss_dice = 0.0
    for i in range(num_classes):
        s = soft[:, i]
        t = onehot[:, i]
        intersect = jnp.sum(s * t)
        y = jnp.sum(t * t)
        z = jnp.sum(s * s)
        loss_dice += 1.0 - (2 * intersect + smooth) / (z + y + smooth)
    loss_dice = loss_dice / num_classes
    return loss_weight[0] * loss_ce + loss_weight[1] * loss_dice


if __name__ == "__main__":
    key = jax.random.PRNGKey(0)
    k1, k2 = jax.random.split(key)

    N, C, H, W = 2, 4, 16, 16
    pred = jax.random.normal(k1, (N, C, H, W), dtype=jnp.float32)
    target = jax.random.randint(k2, (N, H, W), 0, C, dtype=jnp.int32)

    loss = jax.block_until_ready(ce_dice_loss(pred, target, num_classes=C))
    ref = jax.block_until_ready(_reference(pred, target, C))
    assert jnp.allclose(loss, ref, atol=1e-5, rtol=1e-5), (loss, ref)

    print("KERNEL_OK")
</pallas_src>

<mosaic_0001>
module attributes {stable_mosaic.version = 11 : i64} {
  func.func @_ce_dice_kernel(%arg0: i32, %arg1: i32, %arg2: memref<1x4x256xf32, #tpu.memory_space<vmem>>, %arg3: memref<1x1x256xi32, #tpu.memory_space<vmem>>, %arg4: memref<1x4x4xf32, #tpu.memory_space<vmem>>, %arg5: memref<4x128xf32, #tpu.memory_space<vmem>>, %arg6: memref<4x128xf32, #tpu.memory_space<vmem>>, %arg7: memref<4x128xf32, #tpu.memory_space<vmem>>, %arg8: memref<4x128xf32, #tpu.memory_space<vmem>>) attributes {dimension_semantics = [#tpu.dimension_semantics<parallel>, #tpu.dimension_semantics<arbitrary>], iteration_bounds = array<i64: 2, 1>, scalar_prefetch = 0 : i64, scratch_operands = 4 : i64, tpu.core_type = #tpu.core_type<tc>, window_params = [{transform_indices = @transform_0, window_bounds = array<i64: 1, 4, 256>}, {transform_indices = @transform_1, window_bounds = array<i64: 1, 1, 256>}, {transform_indices = @transform_2, window_bounds = array<i64: 1, 4, 4>}]} {
    %c0_i32 = arith.constant 0 : i32
    %0 = arith.cmpi eq, %arg1, %c0_i32 : i32
    %1 = arith.extui %0 : i1 to i32
    %c0_i32_0 = arith.constant 0 : i32
    %2 = arith.cmpi ne, %1, %c0_i32_0 : i32
    scf.if %2 {
      %cst_31 = arith.constant 0.000000e+00 : f32
      %67 = vector.broadcast %cst_31 : f32 to vector<4x128xf32>
      %c0_32 = arith.constant 0 : index
      %c0_33 = arith.constant 0 : index
      %68 = vector.load %arg5[%c0_32, %c0_33] : memref<4x128xf32, #tpu.memory_space<vmem>>, vector<4x128xf32>
      tpu.vector_store %arg5[%c0_32, %c0_33], %67 {strides = array<i32>} : memref<4x128xf32, #tpu.memory_space<vmem>>, vector<4x128xf32>,
      %cst_34 = arith.constant 0.000000e+00 : f32
      %69 = vector.broadcast %cst_34 : f32 to vector<4x128xf32>
      %c0_35 = arith.constant 0 : index
      %c0_36 = arith.constant 0 : index
      %70 = vector.load %arg6[%c0_35, %c0_36] : memref<4x128xf32, #tpu.memory_space<vmem>>, vector<4x128xf32>
      tpu.vector_store %arg6[%c0_35, %c0_36], %69 {strides = array<i32>} : memref<4x128xf32, #tpu.memory_space<vmem>>, vector<4x128xf32>,
      %cst_37 = arith.constant 0.000000e+00 : f32
      %71 = vector.broadcast %cst_37 : f32 to vector<4x128xf32>
      %c0_38 = arith.constant 0 : index
      %c0_39 = arith.constant 0 : index
      %72 = vector.load %arg7[%c0_38, %c0_39] : memref<4x128xf32, #tpu.memory_space<vmem>>, vector<4x128xf32>
      tpu.vector_store %arg7[%c0_38, %c0_39], %71 {strides = array<i32>} : memref<4x128xf32, #tpu.memory_space<vmem>>, vector<4x128xf32>,
      %cst_40 = arith.constant 0.000000e+00 : f32
      %73 = vector.broadcast %cst_40 : f32 to vector<4x128xf32>
      %c0_41 = arith.constant 0 : index
      %c0_42 = arith.constant 0 : index
      %74 = vector.load %arg8[%c0_41, %c0_42] : memref<4x128xf32, #tpu.memory_space<vmem>>, vector<4x128xf32>
      tpu.vector_store %arg8[%c0_41, %c0_42], %73 {strides = array<i32>} : memref<4x128xf32, #tpu.memory_space<vmem>>, vector<4x128xf32>,
    } else {
    }
    %c0 = arith.constant 0 : index
    %c0_1 = arith.constant 0 : index
    %c0_2 = arith.constant 0 : index
    %3 = vector.load %arg2[%c0, %c0_1, %c0_2] : memref<1x4x256xf32, #tpu.memory_space<vmem>>, vector<1x4x256xf32>
    %4 = vector.shape_cast %3 : vector<1x4x256xf32> to vector<4x256xf32>
    %c0_3 = arith.constant 0 : index
    %c0_4 = arith.constant 0 : index
    %c0_5 = arith.constant 0 : index
    %5 = vector.load %arg3[%c0_3, %c0_4, %c0_5] : memref<1x1x256xi32, #tpu.memory_space<vmem>>, vector<1x1x256xi32>
    %6 = vector.shape_cast %5 : vector<1x1x256xi32> to vector<1x256xi32>
    %cst = arith.constant dense<0xFF800000> : vector<256xf32>
    %7 = vector.multi_reduction <maximumf>, %4, %cst [0] : vector<4x256xf32> to vector<256xf32>
    %8 = vector.shape_cast %7 : vector<256xf32> to vector<1x256xf32>
    %9 = vector.broadcast %8 : vector<1x256xf32> to vector<4x256xf32>
    %10 = arith.subf %4, %9 : vector<4x256xf32>
    %11 = math.exp %10 : vector<4x256xf32>
    %cst_6 = arith.constant dense<0.000000e+00> : vector<256xf32>
    %12 = vector.multi_reduction <add>, %11, %cst_6 [0] : vector<4x256xf32> to vector<256xf32>
    %13 = vector.shape_cast %12 : vector<256xf32> to vector<1x256xf32>
    %14 = tpu.reciprocal %13 : vector<1x256xf32> -> vector<1x256xf32>
    %15 = vector.broadcast %14 : vector<1x256xf32> to vector<4x256xf32>
    %16 = arith.mulf %11, %15 : vector<4x256xf32>
    %17 = vector.broadcast %8 : vector<1x256xf32> to vector<4x256xf32>
    %18 = arith.subf %4, %17 : vector<4x256xf32>
    %19 = math.log %13 : vector<1x256xf32>
    %20 = vector.broadcast %19 : vector<1x256xf32> to vector<4x256xf32>
    %21 = arith.subf %18, %20 : vector<4x256xf32>
    %22 = tpu.iota {dimensions = array<i32: 0>} : vector<4x256xi32>
    %23 = vector.broadcast %6 : vector<1x256xi32> to vector<4x256xi32>
    %24 = arith.cmpi eq, %22, %23 : vector<4x256xi32>
    %cst_7 = arith.constant 1.000000e+00 : f32
    %cst_8 = arith.constant 0.000000e+00 : f32
    %25 = vector.broadcast %cst_7 : f32 to vector<4x256xf32>
    %26 = vector.broadcast %cst_8 : f32 to vector<4x256xf32>
    %27 = arith.select %24, %25, %26 : vector<4x256xi1>, vector<4x256xf32>
    %c0_i32_9 = arith.constant 0 : i32
    %28 = vector.broadcast %c0_i32_9 : i32 to vector<1x256xi32>
    %29 = arith.cmpi sge, %6, %28 : vector<1x256xi32>
    %cst_10 = arith.constant 1.000000e+00 : f32
    %cst_11 = arith.constant 0.000000e+00 : f32
    %30 = vector.broadcast %cst_10 : f32 to vector<1x256xf32>
    %31 = vector.broadcast %cst_11 : f32 to vector<1x256xf32>
    %32 = arith.select %29, %30, %31 : vector<1x256xi1>, vector<1x256xf32>
    %c0_12 = arith.constant 0 : index
    %c0_13 = arith.constant 0 : index
    %33 = vector.load %arg5[%c0_12, %c0_13] : memref<4x128xf32, #tpu.memory_space<vmem>>, vector<4x128xf32>
    %34 = arith.mulf %16, %27 : vector<4x256xf32>
    %35 = vector.extract_strided_slice %34 {offsets = [0, 0], sizes = [4, 128], strides = [1, 1]} : vector<4x256xf32> to vector<4x128xf32>
    %36 = vector.extract_strided_slice %34 {offsets = [0, 128], sizes = [4, 128], strides = [1, 1]} : vector<4x256xf32> to vector<4x128xf32>
    %37 = arith.addf %35, %36 : vector<4x128xf32>
    %38 = arith.addf %33, %37 : vector<4x128xf32>
    %c0_14 = arith.constant 0 : index
    %c0_15 = arith.constant 0 : index
    %39 = vector.load %arg5[%c0_14, %c0_15] : memref<4x128xf32, #tpu.memory_space<vmem>>, vector<4x128xf32>
    tpu.vector_store %arg5[%c0_14, %c0_15], %38 {strides = array<i32>} : memref<4x128xf32, #tpu.memory_space<vmem>>, vector<4x128xf32>,
    %c0_16 = arith.constant 0 : index
    %c0_17 = arith.constant 0 : index
    %40 = vector.load %arg6[%c0_16, %c0_17] : memref<4x128xf32, #tpu.memory_space<vmem>>, vector<4x128xf32>
    %41 = arith.mulf %16, %16 : vector<4x256xf32>
    %42 = vector.broadcast %32 : vector<1x256xf32> to vector<4x256xf32>
    %43 = arith.mulf %41, %42 : vector<4x256xf32>
    %44 = vector.extract_strided_slice %43 {offsets = [0, 0], sizes = [4, 128], strides = [1, 1]} : vector<4x256xf32> to vector<4x128xf32>
    %45 = vector.extract_strided_slice %43 {offsets = [0, 128], sizes = [4, 128], strides = [1, 1]} : vector<4x256xf32> to vector<4x128xf32>
    %46 = arith.addf %44, %45 : vector<4x128xf32>
    %47 = arith.addf %40, %46 : vector<4x128xf32>
    %c0_18 = arith.constant 0 : index
    %c0_19 = arith.constant 0 : index
    %48 = vector.load %arg6[%c0_18, %c0_19] : memref<4x128xf32, #tpu.memory_space<vmem>>, vector<4x128xf32>
    tpu.vector_store %arg6[%c0_18, %c0_19], %47 {strides = array<i32>} : memref<4x128xf32, #tpu.memory_space<vmem>>, vector<4x128xf32>,
    %c0_20 = arith.constant 0 : index
    %c0_21 = arith.constant 0 : index
    %49 = vector.load %arg7[%c0_20, %c0_21] : memref<4x128xf32, #tpu.memory_space<vmem>>, vector<4x128xf32>
    %50 = vector.extract_strided_slice %27 {offsets = [0, 0], sizes = [4, 128], strides = [1, 1]} : vector<4x256xf32> to vector<4x128xf32>
    %51 = vector.extract_strided_slice %27 {offsets = [0, 128], sizes = [4, 128], strides = [1, 1]} : vector<4x256xf32> to vector<4x128xf32>
    %52 = arith.addf %50, %51 : vector<4x128xf32>
    %53 = arith.addf %49, %52 : vector<4x128xf32>
    %c0_22 = arith.constant 0 : index
    %c0_23 = arith.constant 0 : index
    %54 = vector.load %arg7[%c0_22, %c0_23] : memref<4x128xf32, #tpu.memory_space<vmem>>, vector<4x128xf32>
    tpu.vector_store %arg7[%c0_22, %c0_23], %53 {strides = array<i32>} : memref<4x128xf32, #tpu.memory_space<vmem>>, vector<4x128xf32>,
    %c0_24 = arith.constant 0 : index
    %c0_25 = arith.constant 0 : index
    %55 = vector.load %arg8[%c0_24, %c0_25] : memref<4x128xf32, #tpu.memory_space<vmem>>, vector<4x128xf32>
    %cst_26 = arith.constant 0.000000e+00 : f32
    %56 = vector.broadcast %cst_26 : f32 to vector<4x256xf32>
    %57 = arith.subf %56, %21 : vector<4x256xf32>
    %58 = arith.mulf %27, %57 : vector<4x256xf32>
    %59 = vector.extract_strided_slice %58 {offsets = [0, 0], sizes = [4, 128], strides = [1, 1]} : vector<4x256xf32> to vector<4x128xf32>
    %60 = vector.extract_strided_slice %58 {offsets = [0, 128], sizes = [4, 128], strides = [1, 1]} : vector<4x256xf32> to vector<4x128xf32>
    %61 = arith.addf %59, %60 : vector<4x128xf32>
    %62 = arith.addf %55, %61 : vector<4x128xf32>
    %c0_27 = arith.constant 0 : index
    %c0_28 = arith.constant 0 : index
    %63 = vector.load %arg8[%c0_27, %c0_28] : memref<4x128xf32, #tpu.memory_space<vmem>>, vector<4x128xf32>
    tpu.vector_store %arg8[%c0_27, %c0_28], %62 {strides = array<i32>} : memref<4x128xf32, #tpu.memory_space<vmem>>, vector<4x128xf32>,
    %c0_i32_29 = arith.constant 0 : i32
    %64 = arith.cmpi eq, %arg1, %c0_i32_29 : i32
    %65 = arith.extui %64 : i1 to i32
    %c0_i32_30 = arith.constant 0 : i32
    %66 = arith.cmpi ne, %65, %c0_i32_30 : i32
    scf.if %66 {
      %c0_31 = arith.constant 0 : index
      %c0_32 = arith.constant 0 : index
      %67 = vector.load %arg5[%c0_31, %c0_32] : memref<4x128xf32, #tpu.memory_space<vmem>>, vector<4x128xf32>
      %cst_33 = arith.constant dense<0.000000e+00> : vector<4xf32>
      %68 = vector.multi_reduction <add>, %67, %cst_33 [1] : vector<4x128xf32> to vector<4xf32>
      %69 = vector.shape_cast %68 : vector<4xf32> to vector<4x1xf32>
      %c0_34 = arith.constant 0 : index
      %c0_35 = arith.constant 0 : index
      %70 = vector.load %arg6[%c0_34, %c0_35] : memref<4x128xf32, #tpu.memory_space<vmem>>, vector<4x128xf32>
      %cst_36 = arith.constant dense<0.000000e+00> : vector<4xf32>
      %71 = vector.multi_reduction <add>, %70, %cst_36 [1] : vector<4x128xf32> to vector<4xf32>
      %72 = vector.shape_cast %71 : vector<4xf32> to vector<4x1xf32>
      %c0_37 = arith.constant 0 : index
      %c0_38 = arith.constant 0 : index
      %73 = vector.load %arg7[%c0_37, %c0_38] : memref<4x128xf32, #tpu.memory_space<vmem>>, vector<4x128xf32>
      %cst_39 = arith.constant dense<0.000000e+00> : vector<4xf32>
      %74 = vector.multi_reduction <add>, %73, %cst_39 [1] : vector<4x128xf32> to vector<4xf32>
      %75 = vector.shape_cast %74 : vector<4xf32> to vector<4x1xf32>
      %c0_40 = arith.constant 0 : index
      %c0_41 = arith.constant 0 : index
      %76 = vector.load %arg8[%c0_40, %c0_41] : memref<4x128xf32, #tpu.memory_space<vmem>>, vector<4x128xf32>
      %cst_42 = arith.constant dense<0.000000e+00> : vector<4xf32>
      %77 = vector.multi_reduction <add>, %76, %cst_42 [1] : vector<4x128xf32> to vector<4xf32>
      %78 = vector.shape_cast %77 : vector<4xf32> to vector<4x1xf32>
      %79 = tpu.concatenate %69, %72, %75, %78 in 1 : vector<4x1xf32>, vector<4x1xf32>, vector<4x1xf32>, vector<4x1xf32> -> vector<4x4xf32>
      %c0_43 = arith.constant 0 : index
      %c0_44 = arith.constant 0 : index
      %c0_45 = arith.constant 0 : index
      %80 = vector.load %arg4[%c0_43, %c0_44, %c0_45] : memref<1x4x4xf32, #tpu.memory_space<vmem>>, vector<1x4x4xf32>
      %81 = vector.shape_cast %80 : vector<1x4x4xf32> to vector<4x4xf32>
      %82 = vector.shape_cast %79 : vector<4x4xf32> to vector<1x4x4xf32>
      tpu.vector_store %arg4[%c0_43, %c0_44, %c0_45], %82 {strides = array<i32>} : memref<1x4x4xf32, #tpu.memory_space<vmem>>, vector<1x4x4xf32>,
    } else {
    }
    return
  }
  func.func @transform_0(%arg0: i32, %arg1: i32) -> (i32, i32, i32) {
    %c0_i32 = arith.constant 0 : i32
    %c0_i32_0 = arith.constant 0 : i32
    return %arg0, %c0_i32, %arg1 : i32, i32, i32
  }
  func.func @transform_1(%arg0: i32, %arg1: i32) -> (i32, i32, i32) {
    %c0_i32 = arith.constant 0 : i32
    %c0_i32_0 = arith.constant 0 : i32
    return %arg0, %c0_i32, %arg1 : i32, i32, i32
  }
  func.func @transform_2(%arg0: i32, %arg1: i32) -> (i32, i32, i32) {
    %c0_i32 = arith.constant 0 : i32
    %c0_i32_0 = arith.constant 0 : i32
    %c0_i32_1 = arith.constant 0 : i32
    return %arg0, %c0_i32, %c0_i32_0 : i32, i32, i32
  }
}

</mosaic_0001>

<bundles_post_ra>
// kernel: tpu_custom_call.1
= control target key start
LH: loop header
LB: loop body
LE: loop exit
PB: predicated region body
PF: predicated region fallthrough
CT: control target
= control target key end

     0   :  { %7 = vsyncpa [#allocation7], 0  ;;  %s1011_s0 = inlined_call_operand.hbm [shape: f32[2,4,256], index: 0, kind: input, shape index: {}]   ;;  %s1012_s1 = inlined_call_operand.hbm [shape: s32[2,1,256], index: 1, kind: input, shape index: {}]   ;;  %s1013_s2 = inlined_call_operand.hbm [shape: f32[2,4,4], index: 2, kind: output, shape index: {}]  }
   0x1   :  { %9 = vsyncpa [#allocation7 + $0x1], 0 }
   0x2   :  { %10 = vsyncpa [#allocation10], 0 }
   0x3   :  { %12 = vsyncpa [#allocation10 + $0x1], 0 }
   0x4   :  { %13 = vsyncpa [#allocation8], 0 }
   0x5   :  { %15 = vsyncpa [#allocation8 + $0x1], 0  ;;  %s764_s9 = smov 0   ;;  %s766_s10 = smov 0  }
   0x6   :  { %s768_s11 = smov 0   ;;  %s770_s12 = smov 0  }
   0x7   :  { %s772_s13 = smov 0   ;;  %s774_s14 = smov 0  }
   0x8 LB: > { %s498_s15 = sadd.s32 4294967295, %s743_s14   ;;  %s499_s16 = sadd.s32 4294967294, %s743_s14   ;;  %s743_s14 = sphi %s774_s14, %s21_s14   ;;  %s739_s13 = sphi %s772_s13, %s1033_s13   ;;  %s735_s12 = sphi %s770_s12, %s1032_s12   ;;  %s731_s11 = sphi %s768_s11, %s1031_s11   ;;  %s727_s10 = sphi %s766_s10, %s1030_s10   ;;  %s723_s9 = sphi %s764_s9, %s1029_s9  }
   0x9   : > { %s33_s17 = sadd.s32 1, %s739_s13  ;;  %s42_s18 = sadd.s32 1, %s731_s11 }
   0xa   : > { %p35_p0 = scmp.ge.s32.totalorder %s33_s17, 2  ;;  %p49_p1 = scmp.ne.s32.totalorder %s731_s11, %s727_s10 }
   0xb   : > { %p50_p2 = scmp.eq.s32.totalorder %s743_s14, 0  ;;  %p55_p3 = scmp.ne.s32.totalorder %s727_s10, %s723_s9 }
   0xc   : > { %s1035_s17 = smov (%p35_p0, %s33_s17), 0  ;;  %p56_p5 = scmp.eq.s32.totalorder %s498_s15, 0 }
   0xd   : > { %p805_p4 = por %p50_p2, %p49_p1  ;;  %s37_s20 = ssub.s32 %s739_s13, %s1035_s17 }
   0xe   : > { %p107_p6 = scmp.eq.s32.totalorder %s498_s15, 1  ;;  %p40_p7 = scmp.eq.s32.totalorder %s37_s20, 0 }
   0xf   : > { %p811_p8 = por %p56_p5, %p55_p3  ;;  %p113_p10 = scmp.eq.s32.totalorder %s499_s16, 1 }
  0x10   : > { %p815_p9 = por %p107_p6, %p49_p1  ;;  %p535_p13 = scmp.lt.s32.totalorder %s743_s14, 2 }
  0x11   : > { %s1017_s21 = scalar_select %p811_p8, 1, 0 }
  0x12   : > { %s1018_s22 = scalar_select %p815_p9, 1, 0 }
  0x13   : > { %s820_s23 = scalar_select %p40_p7, %s731_s11, %s42_s18  }
  0x14   : > { %p822_p11 = por %p113_p10, %p55_p3  ;;  %s829_s25 = sand.u32 1, %s731_s11  }
  0x15   : > { %s502_s26 = sshll.u32 %s829_s25, 3  ;;  %s516_s27 = sshll.u32 %s739_s13, 7 }
  0x16   : > { %s1019_s24 = scalar_select %p822_p11, 1, 0 }
  0x17   : > { %s836_s30 = scalar_lea.hbm %s1011_s0, %s516_s27  ;;  %s137_s3 = scalar_lea.vmem [#allocation6], %s502_s26 }
  0x18   : > { %s147_s4 = sshll.u32 %s137_s3, 4  ;;  %p842_p0 = pnand %p535_p13, %p805_p4  ;;  %s838_s4 = int_to_ptr.vmem [resolvable:$true] %s147_s4 }
  0x19   : > { %s134_s6 = scalar_lea.sflag [#allocation7], %s829_s25  ;;  %s597_s7 = scalar_lea.hbm %s836_s30, 128 }
  0x1a   : > { %p598_p3 = scmp.ne.s32.totalorder %s836_s30, %s597_s7  ;;  %p599_p5 = pneg %p842_p0 }
  0x1b   : > { %s602_s16 = scalar_lea.hbm %s1011_s0, 256  ;;  %p603_p4 = scmp.lt.u32.totalorder %s836_s30, %s1011_s0 }
  0x1c   : > { %p600_p6 = pnand %p599_p5, %p598_p3  ;;  %p604_p10 = scmp.lt.u32.totalorder %s602_s16, %s597_s7 }
  0x1d   : > { %p606_p12 = scmp.lt.u32.totalorder %s597_s7, %s836_s30 }
  0x1e   : > { %p601_p7 = pneg %p600_p6  ;;  %p605_p13 = por %p604_p10, %p603_p4 }
  0x20   : > { %p607_p1 = por %p606_p12, %p605_p13 }
  0x22   : > { %p608_p2 = pnand %p607_p1, %p601_p7 }
  0x24   : > { %611 = shalt.err (!%p608_p2)
}
  0x25   : > { %s612_s20 = scalar_lea.vmem %s838_s4, 128  ;;  %s745_s26 = smov [#allocation6]  }
  0x26   : > { %p613_p3 = scmp.ne.s32.totalorder %s838_s4, %s612_s20  ;;  %s617_s27 = sshll.u32 %s745_s26, 4  ;;  %s618_s27 = int_to_ptr.vmem [resolvable:$false] %s617_s27 }
  0x27   : > { %s619_s28 = scalar_lea.vmem %s618_s27, 256  ;;  %p620_p9 = scmp.lt.s32.totalorder %s838_s4, %s618_s27 }
  0x28   : > { %p615_p6 = pnand %p613_p3, %p599_p5  ;;  %p621_p4 = scmp.lt.s32.totalorder %s619_s28, %s612_s20 }
  0x2a   : > { %p616_p11 = pneg %p615_p6  ;;  %p622_p10 = por %p621_p4, %p620_p9 }
  0x2c   : > { %p623_p12 = pnand %p622_p10, %p616_p11 }
  0x2e   : > { %626 = shalt.err (!%p623_p12)
}
  0x2f   : > { %527 = dma.hbm_to_vmem [thread:$0]  (!%p842_p0), %s836_s30, 128, %s838_s4, %s134_s6  }
  0x30   : > { %p1021_p1 = scmp.lt.s32.totalorder %s743_s14, 3  ;;  %p1022_p2 = scmp.ge.s32.totalorder %s743_s14, 1 }
  0x31   : > { %s505_s3 = sshll.u32 %s829_s25, 1  ;;  %s517_s7 = sshll.u32 %s739_s13, 5 }
  0x32   : > { %p878_p7 = pnand %p1022_p2, %p1021_p1  ;;  %s887_s16 = scalar_lea.hbm %s1012_s1, %s517_s7 }
  0x33   : > { %s158_s18 = scalar_lea.vmem [#allocation9], %s505_s3  ;;  %s155_s30 = scalar_lea.sflag [#allocation10], %s829_s25 }
  0x34   : > { %s1023_s29 = scalar_select %p878_p7, 1, 0 }
  0x35   : > { %s168_s19 = sshll.u32 %s158_s18, 4  ;;  %s627_s4 = scalar_lea.hbm %s887_s16, 32  ;;  %s169_s19 = int_to_ptr.vmem [resolvable:$true] %s168_s19 }
  0x36   : > { %p628_p9 = scmp.ne.s32.totalorder %s887_s16, %s627_s4  ;;  %s632_s26 = scalar_lea.hbm %s1012_s1, 64 }
  0x37   : > { %p633_p3 = scmp.lt.u32.totalorder %s887_s16, %s1012_s1  ;;  %p634_p6 = scmp.lt.u32.totalorder %s632_s26, %s627_s4 }
  0x38   : > { %p630_p11 = pnand %p628_p9, %p599_p5  ;;  %p636_p10 = scmp.lt.u32.totalorder %s627_s4, %s887_s16 }
  0x39   : > { %p635_p4 = por %p634_p6, %p633_p3 }
  0x3a   : > { %p631_p13 = pneg %p630_p11 }
  0x3b   : > { %p637_p12 = por %p636_p10, %p635_p4 }
  0x3d   : > { %p638_p1 = pnand %p637_p12, %p631_p13 }
  0x3f   : > { %641 = shalt.err (!%p638_p1)
}
  0x40   : > { %s642_s25 = scalar_lea.vmem %s169_s19, 32  ;;  %s746_s3 = smov [#allocation9]  }
  0x41   : > { %p643_p2 = scmp.ne.s32.totalorder %s169_s19, %s642_s25  ;;  %s647_s7 = sshll.u32 %s746_s3, 4  ;;  %s648_s7 = int_to_ptr.vmem [resolvable:$false] %s647_s7 }
  0x42   : > { %s649_s8 = scalar_lea.vmem %s648_s7, 64  ;;  %p650_p8 = scmp.lt.s32.totalorder %s169_s19, %s648_s7 }
  0x43   : > { %p645_p9 = pnand %p643_p2, %p599_p5  ;;  %p651_p7 = scmp.lt.s32.totalorder %s649_s8, %s642_s25 }
  0x45   : > { %p646_p11 = pneg %p645_p9  ;;  %p652_p3 = por %p651_p7, %p650_p8 }
  0x47   : > { %p653_p6 = pnand %p652_p3, %p646_p11 }
  0x49   : > { %656 = shalt.err (!%p653_p6)
}
  0x4a   : > { %530 = dma.hbm_to_vmem [thread:$0]  (!%p842_p0), %s887_s16, 32, %s169_s19, %s155_s30  }
  0x4b   : > { %p1024_p13 = scmp.ne.s32.totalorder %s1023_s29, 0 }
  0x4c   : > { %s912_s15 = sand.u32 (!%p1024_p13), 1, %s727_s10   ;;  %p1025_p5 = scmp.ne.s32.totalorder (!%p1024_p13), %s1017_s21, 0 }
  0x4d   : > { %177 = sbr.rel (%p1024_p13) target bundleno = 331 (0x14b), region = 28  ;;  %s509_s18 = sshll.u32 (!%p1024_p13), %s912_s15, 3 }
  0x4e   : > { %s180_s4 = scalar_lea.sflag (!%p1024_p13), [#allocation7], %s912_s15  ;;  %s183_s6 = scalar_lea.vmem (!%p1024_p13), [#allocation6], %s509_s18 }
  0x54   : > { %710 = dma.done.wait (%p1025_p5), %s180_s4, 128  }
  0x55   : > { %712 = vsyncadd (%p1025_p5), %s180_s4, 4294967168  ;;  %s510_s5 = sshll.u32 %s912_s15, 1  ;;  %s189_s29 = scalar_lea.sflag [#allocation10], %s912_s15 }
  0x56   : > { %s192_s16 = scalar_lea.vmem [#allocation9], %s510_s5 }
  0x57   : > { %714 = dma.done.wait (%p1025_p5), %s189_s29, 32  }
  0x58   : > { %716 = vsyncadd (%p1025_p5), %s189_s29, 4294967264  ;;  %v288_v0 = vlaneseq  ;;  %v747_v1 = vmov 0.0   ;;  %vm233_vm0 = vcmask 1043456   ;;  %v228_v5 = vld [vmem:[%s183_s6] sm:$0xff]  ;;  %v229_v6 = vld [vmem:[%s192_s16] sm:$0x3] }
  0x59   : > { %224 = vst [vmem:[#allocation2] sm:$0xf] %v747_v1  ;;  %225 = vst [vmem:[#allocation3] sm:$0xf] %v747_v1  ;;  %v231_v7 = vcombine.high %v228_v5, %v228_v5  ;;  %v234_v8 = vsel %vm233_vm0, %v228_v5, -inf  ;;  %vm302_vm3 = vcmp.ge.s32.totalorder %v229_v6, 0 }
  0x5a   : > { %226 = vst [vmem:[#allocation4] sm:$0xf] %v747_v1  ;;  %227 = vst [vmem:[#allocation5] sm:$0xf] %v747_v1  ;;  %v930_v2 = vshrl.u32 %v288_v0, 7  ;;  %v235_v11 = vrot.slane %v234_v8, 4 }
  0x5b   : > { %v241_v12 = vsel %vm233_vm0, %v231_v7, -inf  ;;  %v303_v50 = vsel %vm302_vm3, 1.0, %v747_v1  ;;  %s511_s21 = sshll.u32 %s912_s15, 2  ;;  %vm369_vm4 = vcmask 7168   ;;  %vm371_vm5 = vcmask 15360   ;;  %s513_s19 = sshll.u32 %s735_s12, 6 }
  0x5c   : > { %v292_v3 = vsub.s32 0, %v930_v2  ;;  %v296_v4 = vsub.s32 1, %v930_v2  ;;  %v236_v13 = vmax.f32 %v234_v8, %v235_v11  ;;  %v242_v14 = vrot.slane %v241_v12, 4  ;;  %s217_s30 = scalar_lea.vmem [#allocation11], %s511_s21  ;;  %s962_s28 = scalar_lea.hbm %s1013_s2, %s513_s19 }
  0x5d   : > { %s391_s20 = sshll.u32 %s217_s30, 4  ;;  %vm373_vm6 = vcmask 23552   ;;  %vm375_vm7 = vcmask 27648   ;;  %s378_s12 = scalar_lea.sflag [#allocation8], %s912_s15  ;;  %s964_s20 = int_to_ptr.vmem [resolvable:$true] %s391_s20 }
  0x5e   : > { %v293_v9 = vrot.slane %v229_v6, %v292_v3  ;;  %v297_v10 = vrot.slane %v229_v6, %v296_v4  ;;  %v237_v19 = vrot.slane %v236_v13, 2  ;;  %v243_v20 = vmax.f32 %v241_v12, %v242_v14  ;;  %s657_s25 = scalar_lea.vmem %s964_s20, 64  ;;  %p1026_p0 = scmp.ne.s32.totalorder %s1018_s22, 0 }
  0x5f   : > { %v322_v53 = vrot.slane %v303_v50, %v292_v3  ;;  %v326_v54 = vrot.slane %v303_v50, %v296_v4  ;;  %p658_p8 = scmp.ne.s32.totalorder %s964_s20, %s657_s25  ;;  %s748_s3 = smov [#allocation11]  }
  0x60   : > { %vm298_vm1 = vcmp.eq.s32.totalorder %v930_v2, %v293_v9  ;;  %vm299_vm2 = vcmp.eq.s32.totalorder %v930_v2, %v297_v10  ;;  %v238_v22 = vmax.f32 %v236_v13, %v237_v19  ;;  %v244_v23 = vrot.slane %v243_v20, 2  ;;  %v304_v7 = vld [vmem:[#allocation2] sm:$0xf]  ;;  %v316_v11 = vld [vmem:[#allocation3] sm:$0xf]  ;;  %s661_s7 = sshll.u32 %s748_s3, 4  ;;  %s662_s7 = int_to_ptr.vmem [resolvable:$false] %s661_s7 }
  0x61   : > { %v939_v15 = vsel %vm298_vm1, 1.0, %v747_v1  ;;  %v942_v16 = vsel %vm299_vm2, 1.0, %v747_v1  ;;  %v336_v17 = vld [vmem:[#allocation4] sm:$0xf]  ;;  %v327_v62 = vcombine.low %v322_v53, %v326_v54  ;;  %p659_p7 = pnand %p658_p8, %p1026_p0  ;;  %s663_s8 = scalar_lea.vmem %s662_s7, 128 }
  0x62   : > { %v337_v18 = vadd.f32 %v942_v16, %v939_v15  ;;  %v239_v24 = vrot.slane %v238_v22, 1  ;;  %v245_v25 = vmax.f32 %v243_v20, %v244_v23  ;;  %v307_v59 = vcombine.low %v939_v15, %v942_v16  ;;  %p664_p10 = scmp.lt.s32.totalorder %s964_s20, %s662_s7  ;;  %p665_p12 = scmp.lt.s32.totalorder %s663_s8, %s657_s25 }
  0x63   : > { %p660_p4 = pneg %p659_p7 }
  0x64   : > { %v338_v21 = vadd.f32 %v337_v18, %v336_v17  ;;  %v240_v26 = vmax.f32 %v238_v22, %v239_v24  ;;  %v246_v27 = vrot.slane %v245_v25, 1  ;;  %v340_v18 = vld [vmem:[#allocation5] sm:$0xf]  ;;  %p666_p1 = por %p665_p12, %p664_p10 }
  0x66   : > { %339 = vst [vmem:[#allocation4] sm:$0xf] %v338_v21  ;;  %v247_v28 = vmax.f32 %v245_v25, %v246_v27  ;;  %p667_p2 = pnand %p666_p1, %p660_p4 }
  0x68   : > { %v250_v29 = vcombine.low %v240_v26, %v247_v28 }
  0x6a   : > { %v252_v32 = vsub.f32 %v228_v5, %v250_v29 }
  0x6c   : > { %v253_v33 = vmul.f32 1.442695, %v252_v32 }
  0x6d   : > { %v361_v30 = vld [vmem:[#allocation4] sm:$0xf] }
  0x6e   : > { %v362_v31 = vsel %vm233_vm0, %v361_v30, 0.0  ;;  %587 = vpow2.f32 %v253_v33 }
  0x6f   : > { %363 = vadd.xlane.f32.xlu1 %v362_v31 }
  0x78   : > { %v588_v34 = vpop.eup %587 }
  0x79   : > { %v256_v35 = vcombine.high %v588_v34, %v588_v34  ;;  %v258_v36 = vsel %vm233_vm0, %v588_v34, 0.0 }
  0x7a   : > { %v259_v37 = vrot.slane %v258_v36, 4 }
  0x7b   : > { %v265_v38 = vsel %vm233_vm0, %v256_v35, 0.0 }
  0x7c   : > { %v260_v39 = vadd.f32 %v259_v37, %v258_v36  ;;  %v266_v40 = vrot.slane %v265_v38, 4 }
  0x7e   : > { %v261_v41 = vrot.slane %v260_v39, 2  ;;  %v267_v42 = vadd.f32 %v266_v40, %v265_v38 }
  0x80   : > { %v262_v43 = vadd.f32 %v261_v41, %v260_v39  ;;  %v268_v44 = vrot.slane %v267_v42, 2 }
  0x82   : > { %v263_v45 = vrot.slane %v262_v43, 1  ;;  %v269_v46 = vadd.f32 %v268_v44, %v267_v42 }
  0x84   : > { %v264_v47 = vadd.f32 %v263_v45, %v262_v43  ;;  %v270_v48 = vrot.slane %v269_v46, 1 }
  0x86   : > { %v271_v49 = vadd.f32 %v270_v48, %v269_v46  ;;  %589 = vrcp.f32 %v264_v47 }
  0x87   : > { %591 = vlog2.f32 %v264_v47 }
  0x88   : > { %593 = vrcp.f32 %v271_v49 }
  0x89   : > { %595 = vlog2.f32 %v271_v49 }
  0x90   : > { %v590_v51 = vpop.eup %589 }
  0x91   : > { %v592_v52 = vpop.eup %591 }
  0x92   : > { %v594_v55 = vpop.eup %593  ;;  %v280_v56 = vmul.f32 0.6931472, %v592_v52 }
  0x93   : > { %v596_v57 = vpop.eup %595  ;;  %v276_v58 = vcombine.low %v590_v51, %v594_v55 }
  0x94   : > { %v282_v60 = vmul.f32 0.6931472, %v596_v57 }
  0x95   : > { %v278_v61 = vmul.f32 %v588_v34, %v276_v58 }
  0x96   : > { %v285_v63 = vcombine.low %v280_v56, %v282_v60 }
  0x97   : > { %v309_v0 = vmul.f32 %v307_v59, %v278_v61  ;;  %v317_v2 = vmul.f32 %v278_v61, %v278_v61 }
  0x98   : > { %v287_v5 = vsub.f32 %v252_v32, %v285_v63 }
  0x99   : > { %v311_v6 = vrot.slane %v309_v0, 4  ;;  %v329_v1 = vmul.f32 %v327_v62, %v317_v2 }
  0x9a   : > { %v341_v8 = vsub.f32 0.0, %v287_v5 }
  0x9b   : > { %v313_v3 = vadd.f32 %v311_v6, %v309_v0  ;;  %v331_v4 = vrot.slane %v329_v1, 4 }
  0x9c   : > { %v343_v9 = vcombine.high %v341_v8, %v341_v8  ;;  %v345_v10 = vmul.f32 %v341_v8, %v939_v15 }
  0x9d   : > { %v314_v12 = vadd.f32 %v313_v3, %v304_v7  ;;  %v333_v13 = vadd.f32 %v331_v4, %v329_v1 }
  0x9e   : > { %v346_v14 = vmul.f32 %v343_v9, %v942_v16 }
  0x9f   : > { %315 = vst [vmem:[#allocation2] sm:$0xf] %v314_v12  ;;  %v334_v17 = vadd.f32 %v333_v13, %v316_v11 }
  0xa0   : > { %v347_v19 = vadd.f32 %v346_v14, %v345_v10 }
  0xa1   : > { %335 = vst [vmem:[#allocation3] sm:$0xf] %v334_v17 }
  0xa2   : > { %v348_v20 = vadd.f32 %v347_v19, %v340_v18 }
  0xa4   : > { %349 = vst [vmem:[#allocation5] sm:$0xf] %v348_v20 }
  0xa6   : > { %v353_v21 = vld [vmem:[#allocation2] sm:$0xf] }
  0xa7   : > { %v354_v22 = vsel %vm233_vm0, %v353_v21, 0.0 }
  0xa8   : > { %355 = vadd.xlane.f32.xlu0 %v354_v22  ;;  %v357_v23 = vld [vmem:[#allocation3] sm:$0xf] }
  0xa9   : > { %v358_v15 = vsel %vm233_vm0, %v357_v23, 0.0 }
  0xab   : > { %v365_v24 = vld [vmem:[#allocation5] sm:$0xf] }
  0xac   : > { %359 = vadd.xlane.f32.xlu0 %v358_v15  ;;  %v366_v16 = vsel %vm233_vm0, %v365_v24, 0.0 }
  0xad   : > { %367 = vadd.xlane.f32.xlu1 %v366_v16 }
  0xfc   : > { %v364_v25 = vpop.xlane.xlu1 %363 }
 0x135   : > { %v356_v26 = vpop.xlane.xlu0 %355 }
 0x139   : > { %v360_v27 = vpop.xlane.xlu0 %359 }
 0x13a   : > { %v370_v28 = vsel %vm369_vm4, %v356_v26, %v360_v27  ;;  %v368_v29 = vpop.xlane.xlu1 %367 }
 0x13b   : > { %v372_v30 = vsel %vm371_vm5, %v370_v28, %v364_v25 }
 0x13c   : > { %v374_v31 = vsel %vm373_vm6, %v372_v30, %v368_v29 }
 0x13d   : > { %376 = vst.msk [vmem:[%s217_s30] sm:$0xf] %vm375_vm7, %v374_v31 }
 0x13e   : > { %670 = shalt.err (!%p667_p2)
}
 0x13f   : > { %s671_s15 = scalar_lea.hbm %s962_s28, 64  ;;  %s675_s6 = scalar_lea.hbm %s1013_s2, 128 }
 0x140   : > { %p672_p9 = scmp.ne.s32.totalorder %s962_s28, %s671_s15  ;;  %p676_p6 = scmp.lt.u32.totalorder %s962_s28, %s1013_s2 }
 0x141   : > { %p677_p13 = scmp.lt.u32.totalorder %s675_s6, %s671_s15  ;;  %p679_p8 = scmp.lt.u32.totalorder %s671_s15, %s962_s28 }
 0x142   : > { %p673_p11 = pnand %p672_p9, %p1026_p0 }
 0x143   : > { %p678_p5 = por %p677_p13, %p676_p6 }
 0x144   : > { %p674_p3 = pneg %p673_p11 }
 0x145   : > { %p680_p7 = por %p679_p8, %p678_p5 }
 0x147   : > { %p681_p4 = pnand %p680_p7, %p674_p3 }
 0x149   : > { %684 = shalt.err (!%p681_p4)
}
 0x14a   : > { %522 = dma.vmem_to_hbm [thread:$0]  (%p1026_p0), %s964_s20, 64, %s962_s28, %s378_s12  }
 0x14b PF: > { %s403_s16 = sand.u32 1, %s723_s9   ;;  %p1027_p10 = scmp.ne.s32.totalorder %s1019_s24, 0 }
 0x14c   : > { %p1028_p12 = scmp.ge.s32.totalorder %s743_s14, 2  ;;  %s404_s21 = scalar_lea.sflag [#allocation8], %s403_s16 }
 0x14e   : > { %p532_p1 = pnand %p1028_p12, %p1027_p10 }
 0x150   : > { %718 = dma.done.wait (!%p532_p1), %s404_s21, 64  }
 0x151   : > { %720 = vsyncadd (!%p532_p1), %s404_s21, 4294967232  ;;  %s21_s14 = sadd.s32 1, %s743_s14   ;;  %s1029_s9 = smov %s727_s10 }
 0x152   : > { %p18_p2 = scmp.ge.s32.totalorder %s21_s14, 4   ;;  %s1030_s10 = smov %s731_s11 }
 0x153   : > { %s1031_s11 = smov %s820_s23  ;;  %s1032_s12 = smov %s739_s13 }
 0x154   : > { %s1033_s13 = smov %s1035_s17  ;;  %20 = sbr.rel (!%p18_p2) target bundleno = 8 (0x8), region = 94 }
 0x15b   :  { %409 = vsyncpa [#allocation7], 1 }
 0x15c   :  { %411 = vsyncpa [#allocation7 + $0x1], 1 }
 0x15d   :  { %412 = vsyncpa [#allocation10], 1 }
 0x15e   :  { %414 = vsyncpa [#allocation10 + $0x1], 1 }
 0x15f   :  { %415 = vsyncpa [#allocation8], 1 }
 0x160   :  { %417 = vsyncpa [#allocation8 + $0x1], 1 }

</bundles_post_ra>
